<compile_context>
chip_gen: v5e
topology: v5e:2x2
jax: 0.10.0
libtpu: 0.0.40
codegen_flags: <defaults>
</compile_context>

<pallas_src>
import functools

import jax
import jax.numpy as jnp
import numpy as np
from jax.experimental import pallas as pl
from jax.experimental.pallas import tpu as pltpu


def _round_up(v, m):
    return (v + m - 1) // m * m


def _choose_tile_rows(batch, n_classes, in_itemsize, out_itemsize,
                      budget_bytes=8 << 20, min_grid_steps=8):
    """Rows per grid step.

    Big enough to amortize the ~0.35us per-step overhead, small enough that
    the *full* double-buffered working set (in + out + lane-padded labels +
    f32 temporaries) stays well inside the 32 MiB scoped-VMEM limit, and
    capped so the grid keeps >= min_grid_steps steps (v7x has 2 TensorCores
    sharing the grid via dimension_semantics=("parallel",)).
    """
    # sublane packing: f32 -> 8, bf16 -> 16, int8/fp8 -> 32
    row_align = 8 * max(1, 4 // max(1, int(in_itemsize)))
    c_lanes = _round_up(n_classes, 128)
    bytes_per_row = (2 * c_lanes * in_itemsize      # logits, double-buffered
                     + 2 * c_lanes * out_itemsize   # probs, double-buffered
                     + 2 * 128 * 4                  # labels block (lane-padded)
                     + 3 * c_lanes * 4)             # f32 temporaries (x, e, ...)
    tb = max(row_align, (budget_bytes // bytes_per_row) // row_align * row_align)
    # keep enough grid steps for megacore sharding on v7x
    cap = _round_up(max(1, pl.cdiv(batch, min_grid_steps)), row_align)
    tb = min(tb, cap)
    tb = min(tb, _round_up(batch, row_align))
    return int(tb)


def _softmax_ce_kernel(nvalid_ref, logits_ref, labels_ref, probs_ref,
                       loss_ref, *, inv_temp):
    """Fused temperature-softmax + per-tile cross-entropy partial sum."""
    x = logits_ref[...].astype(jnp.float32) * inv_temp           # [TB, C]
    tb, c = x.shape

    # numerically-stable softmax over the class axis (dim=1)
    m = jnp.max(x, axis=1, keepdims=True)                        # [TB, 1]
    e = jnp.exp(x - m)                                           # [TB, C]
    s = jnp.sum(e, axis=1, keepdims=True)                        # [TB, 1]
    probs_ref[...] = (e / s).astype(probs_ref.dtype)             # exact normalize

    # cross entropy on the scaled logits; partial sum for this tile only
    lse = m + jnp.log(s)                                         # [TB, 1]
    cls_idx = jax.lax.broadcasted_iota(jnp.int32, (tb, c), 1)    # [TB, C]
    picked = jnp.sum(jnp.where(cls_idx == labels_ref[...], x, 0.0),
                     axis=1, keepdims=True)                      # [TB, 1]
    nll = lse - picked                                           # [TB, 1]

    # mask rows beyond the true batch (ragged tail of the last grid step)
    row = (pl.program_id(0) * tb
           + jax.lax.broadcasted_iota(jnp.int32, (tb, 1), 0))
    nll = jnp.where(row < nvalid_ref[0], nll, 0.0)
    loss_ref[0, 0] = jnp.sum(nll)


def _softmax_only_kernel(logits_ref, probs_ref, *, inv_temp):
    x = logits_ref[...].astype(jnp.float32) * inv_temp
    m = jnp.max(x, axis=1, keepdims=True)
    e = jnp.exp(x - m)
    s = jnp.sum(e, axis=1, keepdims=True)
    probs_ref[...] = (e / s).astype(probs_ref.dtype)


class SoftmaxPallas:
    """JAX/Pallas equivalent of the PyTorch `Softmax` loss module."""

    def __init__(self, temp: float):
        self.temp = float(temp)

    def __call__(self, x, logits, labels=None):
        b, c = logits.shape
        in_dt = logits.dtype
        out_dt = in_dt if jnp.issubdtype(in_dt, jnp.floating) else jnp.float32
        in_isz = jnp.dtype(in_dt).itemsize
        out_isz = jnp.dtype(out_dt).itemsize

        tb = _choose_tile_rows(b, c, in_isz, out_isz)
        nb = int(pl.cdiv(b, tb))
        inv_temp = 1.0 / self.temp

        compiler_params = pltpu.CompilerParams(
            dimension_semantics=("parallel",),      # megacore-shardable grid
            vmem_limit_bytes=32 * 1024 * 1024,      # headroom on v7x (64 MiB/TC)
        )

        if labels is None:
            probs = pl.pallas_call(
                functools.partial(_softmax_only_kernel, inv_temp=inv_temp),
                out_shape=jax.ShapeDtypeStruct((b, c), out_dt),
                grid=(nb,),
                in_specs=[pl.BlockSpec((tb, c), lambda i: (i, 0))],
                out_specs=pl.BlockSpec((tb, c), lambda i: (i, 0)),
                compiler_params=compiler_params,
            )(logits)
            return probs, jnp.zeros((), jnp.float32)

        n_valid = jnp.array([b], dtype=jnp.int32)
        labels2d = labels.astype(jnp.int32).reshape(b, 1)

        probs, loss_parts = pl.pallas_call(
            functools.partial(_softmax_ce_kernel, inv_temp=inv_temp),
            out_shape=(
                jax.ShapeDtypeStruct((b, c), out_dt),
                jax.ShapeDtypeStruct((nb, 1), jnp.float32),
            ),
            grid=(nb,),
            in_specs=[
                pl.BlockSpec(memory_space=pltpu.MemorySpace.SMEM),  # n_valid
                pl.BlockSpec((tb, c), lambda i: (i, 0)),            # logits
                pl.BlockSpec((tb, 1), lambda i: (i, 0)),            # labels
            ],
            out_specs=(
                pl.BlockSpec((tb, c), lambda i: (i, 0)),            # probs
                pl.BlockSpec((1, 1), lambda i: (i, 0),              # loss partials
                             memory_space=pltpu.MemorySpace.SMEM),
            ),
            compiler_params=compiler_params,
        )(n_valid, logits, labels2d)

        # mean over the *global* batch, computed from per-tile partial sums
        loss = jnp.sum(loss_parts) / jnp.float32(b)
        return probs, loss


if __name__ == "__main__":
    key = jax.random.PRNGKey(0)
    k1, k2, k3 = jax.random.split(key, 3)

    B, C = 8, 32          # batch, num classes
    TEMP = 2.0            # config.temp

    x = jax.random.normal(k1, (B, C), dtype=jnp.float32)       # unused by forward
    logits = jax.random.normal(k2, (B, C), dtype=jnp.float32)
    labels = jax.random.randint(k3, (B,), 0, C, dtype=jnp.int32)

    module = SoftmaxPallas(temp=TEMP)
    probs, loss = module(x, logits, labels)
    jax.block_until_ready((probs, loss))

    # reference check (plain JAX)
    scaled = logits / TEMP
    probs_ref = jax.nn.softmax(scaled, axis=1)
    lse = jax.scipy.special.logsumexp(scaled, axis=1)
    loss_ref = jnp.mean(lse - scaled[jnp.arange(B), labels])

    assert np.allclose(np.asarray(probs), np.asarray(probs_ref), atol=1e-5)
    assert np.allclose(np.asarray(loss), np.asarray(loss_ref), atol=1e-5)

    # labels=None path
    probs2, zero = module(x, logits, None)
    jax.block_until_ready(probs2)
    assert float(zero) == 0.0
    assert np.allclose(np.asarray(probs2), np.asarray(probs_ref), atol=1e-5)

    # ragged batch tail (B not a multiple of the row tile) exercises the
    # partial boundary block + in-kernel row mask path
    B2 = 10
    logits2 = jax.random.normal(k2, (B2, C), dtype=jnp.float32)
    labels2 = jax.random.randint(k3, (B2,), 0, C, dtype=jnp.int32)
    probs3, loss3 = module(x, logits2, labels2)
    jax.block_until_ready((probs3, loss3))

    scaled2 = logits2 / TEMP
    probs_ref2 = jax.nn.softmax(scaled2, axis=1)
    lse2 = jax.scipy.special.logsumexp(scaled2, axis=1)
    loss_ref2 = jnp.mean(lse2 - scaled2[jnp.arange(B2), labels2])
    assert np.allclose(np.asarray(probs3), np.asarray(probs_ref2), atol=1e-5)
    assert np.allclose(np.asarray(loss3), np.asarray(loss_ref2), atol=1e-5)

    print("KERNEL_OK")
</pallas_src>

<mosaic_0001>
module attributes {stable_mosaic.version = 11 : i64} {
  func.func @_softmax_ce_kernel(%arg0: i32, %arg1: memref<1xi32, #tpu.memory_space<smem>>, %arg2: memref<8x32xf32, #tpu.memory_space<vmem>>, %arg3: memref<8x1xi32, #tpu.memory_space<vmem>>, %arg4: memref<8x32xf32, #tpu.memory_space<vmem>>, %arg5: memref<1x1xf32, #tpu.memory_space<smem>>) attributes {dimension_semantics = [#tpu.dimension_semantics<parallel>], iteration_bounds = array<i64: 1>, scalar_prefetch = 0 : i64, scratch_operands = 0 : i64, tpu.core_type = #tpu.core_type<tc>, window_params = [{transform_indices = @transform_0, window_bounds = array<i64: 1>}, {transform_indices = @transform_1, window_bounds = array<i64: 8, 32>}, {transform_indices = @transform_2, window_bounds = array<i64: 8, 1>}, {transform_indices = @transform_3, window_bounds = array<i64: 8, 32>}, {transform_indices = @transform_4, window_bounds = array<i64: 1, 1>}]} {
    %c0 = arith.constant 0 : index
    %c0_0 = arith.constant 0 : index
    %0 = vector.load %arg2[%c0, %c0_0] : memref<8x32xf32, #tpu.memory_space<vmem>>, vector<8x32xf32>
    %cst = arith.constant 5.000000e-01 : f32
    %1 = vector.broadcast %cst : f32 to vector<8x32xf32>
    %2 = arith.mulf %0, %1 : vector<8x32xf32>
    %cst_1 = arith.constant dense<0xFF800000> : vector<8xf32>
    %3 = vector.multi_reduction <maximumf>, %2, %cst_1 [1] : vector<8x32xf32> to vector<8xf32>
    %4 = vector.shape_cast %3 : vector<8xf32> to vector<8x1xf32>
    %5 = vector.broadcast %4 : vector<8x1xf32> to vector<8x32xf32>
    %6 = arith.subf %2, %5 : vector<8x32xf32>
    %7 = math.exp %6 : vector<8x32xf32>
    %cst_2 = arith.constant dense<0.000000e+00> : vector<8xf32>
    %8 = vector.multi_reduction <add>, %7, %cst_2 [1] : vector<8x32xf32> to vector<8xf32>
    %9 = vector.shape_cast %8 : vector<8xf32> to vector<8x1xf32>
    %10 = vector.broadcast %9 : vector<8x1xf32> to vector<8x32xf32>
    %11 = arith.divf %7, %10 : vector<8x32xf32>
    %c0_3 = arith.constant 0 : index
    %c0_4 = arith.constant 0 : index
    %12 = vector.load %arg4[%c0_3, %c0_4] : memref<8x32xf32, #tpu.memory_space<vmem>>, vector<8x32xf32>
    tpu.vector_store %arg4[%c0_3, %c0_4], %11 {strides = array<i32>} : memref<8x32xf32, #tpu.memory_space<vmem>>, vector<8x32xf32>,
    %13 = math.log %9 : vector<8x1xf32>
    %14 = arith.addf %4, %13 : vector<8x1xf32>
    %15 = tpu.iota {dimensions = array<i32: 1>} : vector<8x32xi32>
    %c0_5 = arith.constant 0 : index
    %c0_6 = arith.constant 0 : index
    %16 = vector.load %arg3[%c0_5, %c0_6] : memref<8x1xi32, #tpu.memory_space<vmem>>, vector<8x1xi32>
    %17 = vector.broadcast %16 : vector<8x1xi32> to vector<8x32xi32>
    %18 = arith.cmpi eq, %15, %17 : vector<8x32xi32>
    %cst_7 = arith.constant 0.000000e+00 : f32
    %19 = vector.broadcast %cst_7 : f32 to vector<8x32xf32>
    %20 = arith.select %18, %2, %19 : vector<8x32xi1>, vector<8x32xf32>
    %cst_8 = arith.constant dense<0.000000e+00> : vector<8xf32>
    %21 = vector.multi_reduction <add>, %20, %cst_8 [1] : vector<8x32xf32> to vector<8xf32>
    %22 = vector.shape_cast %21 : vector<8xf32> to vector<8x1xf32>
    %23 = arith.subf %14, %22 : vector<8x1xf32>
    %c8_i32 = arith.constant 8 : i32
    %24 = arith.muli %arg0, %c8_i32 : i32
    %25 = tpu.iota {dimensions = array<i32: 0>} : vector<8x1xi32>
    %26 = vector.broadcast %24 : i32 to vector<8x1xi32>
    %27 = arith.addi %26, %25 : vector<8x1xi32>
    %c0_9 = arith.constant 0 : index
    %28 = memref.load %arg1[%c0_9] : memref<1xi32, #tpu.memory_space<smem>>
    %29 = vector.broadcast %28 : i32 to vector<8x1xi32>
    %30 = arith.cmpi slt, %27, %29 : vector<8x1xi32>
    %cst_10 = arith.constant 0.000000e+00 : f32
    %31 = vector.broadcast %cst_10 : f32 to vector<8x1xf32>
    %32 = arith.select %30, %23, %31 : vector<8x1xi1>, vector<8x1xf32>
    %33 = vector.shape_cast %32 : vector<8x1xf32> to vector<1x8x1xf32>
    %cst_11 = arith.constant dense<0.000000e+00> : vector<1xf32>
    %34 = vector.multi_reduction <add>, %33, %cst_11 [1, 2] : vector<1x8x1xf32> to vector<1xf32>
    %35 = vector.shape_cast %34 : vector<1xf32> to vector<1x1x1xf32>
    %36 = vector.extract %35[0, 0, 0] : f32 from vector<1x1x1xf32>
    %c0_12 = arith.constant 0 : index
    %c0_13 = arith.constant 0 : index
    %37 = memref.load %arg5[%c0_12, %c0_13] : memref<1x1xf32, #tpu.memory_space<smem>>
    memref.store %36, %arg5[%c0_12, %c0_13] : memref<1x1xf32, #tpu.memory_space<smem>>
    return
  }
  func.func @transform_0(%arg0: i32) -> i32 {
    %c0_i32 = arith.constant 0 : i32
    %c0_i32_0 = arith.constant 0 : i32
    return %c0_i32 : i32
  }
  func.func @transform_1(%arg0: i32) -> (i32, i32) {
    %c0_i32 = arith.constant 0 : i32
    %c0_i32_0 = arith.constant 0 : i32
    return %arg0, %c0_i32 : i32, i32
  }
  func.func @transform_2(%arg0: i32) -> (i32, i32) {
    %c0_i32 = arith.constant 0 : i32
    %c0_i32_0 = arith.constant 0 : i32
    return %arg0, %c0_i32 : i32, i32
  }
  func.func @transform_3(%arg0: i32) -> (i32, i32) {
    %c0_i32 = arith.constant 0 : i32
    %c0_i32_0 = arith.constant 0 : i32
    return %arg0, %c0_i32 : i32, i32
  }
  func.func @transform_4(%arg0: i32) -> (i32, i32) {
    %c0_i32 = arith.constant 0 : i32
    %c0_i32_0 = arith.constant 0 : i32
    return %arg0, %c0_i32 : i32, i32
  }
}

</mosaic_0001>

<bundles_post_ra>
// kernel: tpu_custom_call.1
= control target key start
LH: loop header
LB: loop body
LE: loop exit
PB: predicated region body
PF: predicated region fallthrough
CT: control target
= control target key end

     0   :  { %11 = vsyncpa [#allocation4], 0  ;;  %vm21_vm0 = vcmask 261120   ;;  %s214_s0 = inlined_call_operand.<no memory space> [shape: s32[1], index: 0, kind: input, shape index: {}]   ;;  %s215_s1 = inlined_call_operand.vmem [shape: f32[8,32], index: 1, kind: input, shape index: {}]   ;;  %s216_s2 = inlined_call_operand.vmem [shape: s32[8,1], index: 2, kind: input, shape index: {}]   ;;  %s217_s3 = inlined_call_operand.hbm [shape: f32[8,32], index: 3, kind: output, shape index: {0}]   ;;  %s218_s4 = inlined_call_operand.hbm [shape: f32[1,1], index: 4, kind: output, shape index: {1}]  }
   0x1   :  { %v19_v0 = vld [vmem:[%s215_s1] sm:$0xff] }
   0x2   :  { %12 = vsyncpa [#allocation5], 0  ;;  %v20_v1 = vmul.f32 0.5, %v19_v0  ;;  %v167_v2 = vmov 0   ;;  %v52_v4 = vld [vmem:[%s216_s2] sm:$0xff]  ;;  %v50_v10 = vlaneseq  ;;  %v68_v21 = vstv %s214_s0  ;;  %s168_s0 = smov [#allocation3]  }
   0x3   :  { %120 = vset.pattern.permute.xlu0 %v167_v2  ;;  %vm71_vm4 = vcmask 7168   ;;  %s89_s19 = sshll.u32 %s168_s0, 4  ;;  %s91_s22 = sshll.u32 %s217_s3, 4  ;;  %s90_s19 = int_to_ptr.vmem [resolvable:$true] %s89_s19  ;;  %s92_s22 = int_to_ptr.hbm [resolvable:$true] %s91_s22 }
   0x4   :  { %v22_v3 = vsel %vm21_vm0, %v20_v1, -inf  ;;  %v51_v11 = vand.u32 127, %v50_v10  ;;  %v64_v19 = vshrl.u32 %v50_v10, 7  ;;  %s100_s25 = sshll.u32 %s218_s4, 4  ;;  %s169_s27 = smov [#allocation6]   ;;  %s101_s25 = int_to_ptr.hbm [resolvable:$true] %s100_s25 }
   0x5   :  { %23 = vmax.xlane.f32.xlu0 %v22_v3 }
   0x6   :  { %vm69_vm2 = vcmp.lt.s32.totalorder %v64_v19, %v68_v21 }
  0x19   :  { %54 = vperm.xlu0 %120, %v52_v4  }
  0x78   :  { %v24_v5 = vpop.xlane.xlu0 %23 }
  0x79   :  { %v25_v6 = vsub.f32 %v20_v1, %v24_v5 }
  0x7b   :  { %v26_v7 = vmul.f32 1.442695, %v25_v6 }
  0x7d   :  { %121 = vpow2.f32 %v26_v7 }
  0x83   :  { %v122_v8 = vpop.eup %121 }
  0x84   :  { %v28_v9 = vsel %vm21_vm0, %v122_v8, 0.0 }
  0x85   :  { %29 = vadd.xlane.f32.xlu1 %v28_v9 }
  0x8b   :  { %v55_v12 = vpop.permute.xlu0 %54 }
  0x8c   :  { %vm56_vm1 = vcmp.eq.s32.totalorder %v51_v11, %v55_v12 }
  0x8d   :  { %v57_v13 = vsel %vm56_vm1, %v20_v1, 0.0 }
  0x8e   :  { %v58_v14 = vsel %vm21_vm0, %v57_v13, 0.0 }
  0x8f   :  { %59 = vadd.xlane.f32.xlu1 %v58_v14 }
  0xf8   :  { %v30_v15 = vpop.xlane.xlu1 %29 }
  0xf9   :  { %123 = vrcp.f32 %v30_v15  ;;  %v42_v25 = vand.u32 2147483648, %v30_v15  ;;  %v40_v27 = vand.u32 2147483647, %v30_v15  ;;  %vm36_vm5 = vweird.f32 %v30_v15 }
  0xfa   :  { %125 = vlog2.f32 %v30_v15 }
  0xfb   :  { %v43_v31 = vor.u32 1.1754944e-38, %v42_v25  ;;  %vm41_vm7 = vcmp.eq.f32.partialorder %v40_v27, 8.507059e+37 }
  0xff   :  { %v124_v16 = vpop.eup %123 }
 0x100   :  { %v126_v17 = vpop.eup %125  ;;  %v32_v18 = vmul.f32 %v124_v16, %v30_v15  ;;  %vm37_vm3 = vweird.f32 %v124_v16 }
 0x101   :  { %v48_v20 = vmul.f32 0.6931472, %v126_v17  ;;  %vm38_vm6 = vmor %vm36_vm5, %vm37_vm3 }
 0x102   :  { %v33_v22 = vsub.f32 1.0, %v32_v18  ;;  %v60_v23 = vpop.xlane.xlu1 %59 }
 0x103   :  { %v49_v24 = vadd.f32 %v48_v20, %v24_v5 }
 0x104   :  { %v34_v26 = vmul.f32 %v124_v16, %v33_v22 }
 0x105   :  { %v61_v28 = vsub.f32 %v49_v24, %v60_v23 }
 0x106   :  { %v35_v29 = vadd.f32 %v124_v16, %v34_v26 }
 0x107   :  { %v70_v30 = vsel %vm69_vm2, %v61_v28, 0.0 }
 0x108   :  { %v72_v32 = vsel %vm71_vm4, %v70_v30, 0.0  ;;  %v39_v33 = vsel %vm38_vm6, %v124_v16, %v35_v29 }
 0x109   :  { %73 = vadd.xlane.f32.xlu2 %v72_v32  ;;  %v44_v34 = vsel %vm41_vm7, %v43_v31, %v39_v33 }
 0x10a   :  { %v45_v35 = vmul.f32 %v122_v8, %v44_v34 }
 0x10c   :  { %46 = vst.msk [vmem:[#allocation3] sm:$0xff] %vm21_vm0, %v45_v35 }
 0x10d   :  { %94 = dma.vmem_to_hbm [thread:$0]  %s90_s19, 128, %s92_s22, [#allocation4]  }
 0x17c   :  { %v74_v36 = vpop.xlane.xlu2 %73 }
 0x17d   :  { %v75_v37 = vrot.slane %v74_v36, 4 }
 0x17f   :  { %v76_v38 = vadd.f32 %v75_v37, %v74_v36 }
 0x181   :  { %v77_v39 = vrot.slane %v76_v38, 2 }
 0x183   :  { %v78_v40 = vadd.f32 %v77_v39, %v76_v38 }
 0x185   :  { %v79_v41 = vrot.slane %v78_v40, 1 }
 0x187   :  { %v80_v42 = vadd.f32 %v79_v41, %v78_v40 }
 0x189   :  { %115 = vpush %v80_v42 }
 0x1ba   :  { %s116_s26 = spop %115 }
 0x1bb   :  { %83 = sst [smem:[#allocation6]] %s116_s26 }
 0x1bc   :  { %103 = dma.smem_to_hbm %s169_s27, 16, %s101_s25, [#allocation5]  }
 0x1bd   :  { %163 = dma.done.wait [#allocation4], 128  }
 0x1be   :  { %164 = vsyncadd [#allocation4], 4294967168 }
 0x1bf   :  { %165 = dma.done.wait [#allocation5], 16  }
 0x1c0   :  { %166 = vsyncadd [#allocation5], 4294967280 }
 0x1c1   :  { %112 = sfence }
 0x1c2   :  { %113 = vsyncpa [#allocation4], 1 }
 0x1c3   :  { %114 = vsyncpa [#allocation5], 1 }

</bundles_post_ra>
